<compile_context>
chip_gen: v5e
topology: v5e:2x2
jax: 0.10.0
libtpu: 0.0.40
codegen_flags: <defaults>
</compile_context>

<pallas_src>
import numpy as np
import jax
import jax.numpy as jnp
from jax.experimental import pallas as pl
from jax.experimental.pallas import tpu as pltpu

# ----- small, module-consistent config -----
B, S = 2, 8
NOTES_VOCAB, DUR_VOCAB = 16, 8
EMBED = 32
HEADS = 4
HEAD_DIM = EMBED // HEADS
KEY_DIM = 8        # present in the PyTorch module signature, unused by the math
FF = 64
EPS = 1e-5
LANE = 128         # every packed segment / output slab is 128-lane aligned


def sine_pos_enc(seq_len, d, max_wavelength=10000.0):
    position = jnp.arange(seq_len, dtype=jnp.float32)[:, None]
    div_term = jnp.exp(
        jnp.arange(0, d, 2, dtype=jnp.float32) * (-np.log(max_wavelength) / d))
    ang = position * div_term
    pe = jnp.zeros((seq_len, d), jnp.float32)
    pe = pe.at[:, 0::2].set(jnp.sin(ang))
    pe = pe.at[:, 1::2].set(jnp.cos(ang))
    return pe


def _layernorm(x, g, b):
    mu = jnp.mean(x, axis=-1, keepdims=True)
    var = jnp.mean((x - mu) ** 2, axis=-1, keepdims=True)
    return (x - mu) * jax.lax.rsqrt(var + EPS) * g + b


# --------------------------- Pallas kernel ---------------------------
def make_kernel(batch, seq, heads, embed, ff, nv, dv):
    BS = batch * seq
    hd = embed // heads
    scale = 1.0 / float(np.sqrt(hd))

    def kernel(x_ref, wpack_ref, w2t_ref, bpack_ref, mask_ref, fold_ref,
               logits_ref, attn_ref):
        E = embed
        x = x_ref[...]                                    # (BS, E)

        # --- packed, pre-transposed weights: each segment 128-lane aligned ---
        w_inT = wpack_ref[:, 0:3 * E]                     # (E, 3E)   @ lane 0
        w_outT = wpack_ref[:, LANE:LANE + E]              # (E, E)    @ lane 128
        w_ff1T = wpack_ref[:, 2 * LANE:2 * LANE + ff]     # (E, FF)   @ lane 256
        w_headT = wpack_ref[:, 3 * LANE:4 * LANE]         # (E, 128)  @ lane 384 (zero-padded)
        w_ff2T = w2t_ref[...]                             # (FF, E)

        # --- packed biases / LN params: one row each, lane offset 0 ---
        in_b = bpack_ref[0:1, 0:3 * E]
        out_b = bpack_ref[1:2, 0:E]
        ln1_g = bpack_ref[2:3, 0:E]
        ln1_b = bpack_ref[3:4, 0:E]
        ff_b1 = bpack_ref[4:5, 0:ff]
        ff_b2 = bpack_ref[5:6, 0:E]
        ln2_g = bpack_ref[6:7, 0:E]
        ln2_b = bpack_ref[7:8, 0:E]
        head_b = bpack_ref[8:9, :]                        # (1, 128) zero-padded

        # --- fused multi-head self-attention (dropout = identity / eval) ---
        qkv = jnp.dot(x, w_inT, preferred_element_type=jnp.float32) + in_b

        # row-stack heads: (BS, E) -> (H*BS, hd), head-major rows
        def rows(base):
            return jnp.concatenate(
                [qkv[:, base + h * hd:base + (h + 1) * hd]
                 for h in range(heads)], axis=0)

        qr = rows(0) * scale                              # (H*BS, hd)
        kr = rows(E)                                      # (H*BS, hd)
        vr = rows(2 * E)                                  # (H*BS, hd)

        # one fused score matmul; host-built mask is block-diagonal over
        # (head, batch) AND causal (additive -1e30)
        s = jax.lax.dot_general(
            qr, kr, (((1,), (1,)), ((), ())),
            preferred_element_type=jnp.float32)           # (H*BS, H*BS)
        s = s + mask_ref[...]

        # hand-rolled softmax; divide goes to the EUP via approx reciprocal
        m = jnp.max(s, axis=-1, keepdims=True)
        e = jnp.exp(s - m)
        denom = jnp.sum(e, axis=-1, keepdims=True)
        p = e * pl.reciprocal(denom, approx=True)         # (H*BS, H*BS)

        ctx_r = jnp.dot(p, vr, preferred_element_type=jnp.float32)  # (H*BS, hd)
        # un-stack heads back to lanes: sublane slices are 8-aligned (free)
        ctx = jnp.concatenate(
            [ctx_r[h * BS:(h + 1) * BS, :] for h in range(heads)], axis=1)
        attn_out = (jnp.dot(ctx, w_outT, preferred_element_type=jnp.float32)
                    + out_b)

        x1 = _layernorm(x + attn_out, ln1_g, ln1_b)

        # --- feed-forward ---
        h1 = jnp.maximum(
            jnp.dot(x1, w_ff1T, preferred_element_type=jnp.float32) + ff_b1,
            0.0)
        ffn = jnp.dot(h1, w_ff2T, preferred_element_type=jnp.float32) + ff_b2
        x2 = _layernorm(x1 + ffn, ln2_g, ln2_b)

        # --- fused output heads (note | duration), lane-dense 128-wide store ---
        logits_ref[...] = (
            jnp.dot(x2, w_headT, preferred_element_type=jnp.float32) + head_b)

        # --- head-averaged attention weights via zero-block folds ---
        # cross-(head,batch) probabilities are exactly 0 (f32 exp underflow of
        # the -1e30 bias), so block sums recover each batch's S x S block.
        p_hs = p[0:BS, :]
        for h in range(1, heads):                         # 8-aligned sublane slices
            p_hs = p_hs + p[h * BS:(h + 1) * BS, :]       # (BS, H*BS)
        # fold already carries the 1/heads factor; output is (BS, 128) dense
        attn_ref[...] = jnp.dot(p_hs, fold_ref[...],
                                preferred_element_type=jnp.float32)

    return kernel


def transformer_forward(emb, params):
    B_, S_, E_ = emb.shape
    BS = B_ * S_
    HBS = HEADS * BS
    assert 3 * E_ <= LANE and FF <= LANE and NOTES_VOCAB + DUR_VOCAB <= LANE
    x_flat = emb.reshape(BS, E_)

    def pad_lanes(w):
        return jnp.pad(w, ((0, 0), (0, LANE - w.shape[1])))

    # host-side weight packing: pre-transposed, each segment on its own
    # 128-lane slab (zero padded)
    head_wT = jnp.concatenate(
        [params["note_w"], params["dur_w"]], axis=0).T               # (E, NV+DV)
    wpack = jnp.concatenate(
        [pad_lanes(params["in_proj_w"].T),                           # (E, 128)
         pad_lanes(params["out_proj_w"].T),                          # (E, 128)
         pad_lanes(params["ffn_w1"].T),                              # (E, 128)
         pad_lanes(head_wT)], axis=1)                                # (E, 512)
    w2t = params["ffn_w2"].T                                         # (FF, E)

    # biases / LN params: one per sublane row, all at lane offset 0
    bpack = jnp.concatenate(
        [pad_lanes(v) for v in
         [params["in_proj_b"], params["out_proj_b"],
          params["ln1_g"], params["ln1_b"],
          params["ffn_b1"], params["ffn_b2"],
          params["ln2_g"], params["ln2_b"],
          jnp.concatenate([params["note_b"], params["dur_b"]], axis=1)]],
        axis=0)                                                      # (9, 128)

    # host-precomputed fused mask: same head AND same batch AND causal
    idx = np.arange(HBS)
    h_i, m_i = idx // BS, idx % BS
    b_i, t_i = m_i // S_, m_i % S_
    allow = ((h_i[:, None] == h_i[None, :])
             & (b_i[:, None] == b_i[None, :])
             & (t_i[None, :] <= t_i[:, None]))
    mask_bias = jnp.asarray(np.where(allow, 0.0, -1e30).astype(np.float32))

    # fold matrix: sums the S-wide column blocks (off-blocks are exactly 0)
    # and applies the 1/heads average; padded to 128 lanes for a dense store.
    fold_np = np.zeros((HBS, LANE), np.float32)
    fold_np[np.arange(HBS), np.arange(HBS) % S_] = 1.0 / HEADS
    fold = jnp.asarray(fold_np)

    kernel = make_kernel(B_, S_, HEADS, E_, FF, NOTES_VOCAB, DUR_VOCAB)

    logits_pad, attn_pad = pl.pallas_call(
        kernel,
        out_shape=(jax.ShapeDtypeStruct((BS, LANE), jnp.float32),
                   jax.ShapeDtypeStruct((BS, LANE), jnp.float32)),
        grid=(1,),
        in_specs=[pl.BlockSpec((BS, E_), lambda i: (0, 0)),
                  pl.BlockSpec(wpack.shape, lambda i: (0, 0)),
                  pl.BlockSpec(w2t.shape, lambda i: (0, 0)),
                  pl.BlockSpec(bpack.shape, lambda i: (0, 0)),
                  pl.BlockSpec(mask_bias.shape, lambda i: (0, 0)),
                  pl.BlockSpec(fold.shape, lambda i: (0, 0))],
        out_specs=(pl.BlockSpec((BS, LANE), lambda i: (0, 0)),
                   pl.BlockSpec((BS, LANE), lambda i: (0, 0))),
        compiler_params=pltpu.CompilerParams(
            dimension_semantics=("arbitrary",)),
    )(x_flat, wpack, w2t, bpack, mask_bias, fold)

    note_logits = logits_pad[:, :NOTES_VOCAB].reshape(B_, S_, NOTES_VOCAB)
    dur_logits = logits_pad[:, NOTES_VOCAB:NOTES_VOCAB + DUR_VOCAB].reshape(
        B_, S_, DUR_VOCAB)
    attn_w = attn_pad[:, :S_].reshape(B_, S_, S_)
    return note_logits, dur_logits, attn_w


# --------------------------- JAX glue ---------------------------
def init_params(key):
    ks = jax.random.split(key, 18)

    def n(k, shape, scale=0.02):
        return (scale * jax.random.normal(k, shape)).astype(jnp.float32)

    p = {}
    p["note_table"] = n(ks[0], (NOTES_VOCAB, EMBED // 2), 0.05)
    p["dur_table"] = n(ks[1], (DUR_VOCAB, EMBED // 2), 0.05)
    p["in_proj_w"] = n(ks[2], (3 * EMBED, EMBED))
    p["in_proj_b"] = n(ks[3], (1, 3 * EMBED), 0.01)
    p["out_proj_w"] = n(ks[4], (EMBED, EMBED))
    p["out_proj_b"] = n(ks[5], (1, EMBED), 0.01)
    p["ln1_g"] = jnp.ones((1, EMBED), jnp.float32) + n(ks[6], (1, EMBED), 0.01)
    p["ln1_b"] = n(ks[7], (1, EMBED), 0.01)
    p["ffn_w1"] = n(ks[8], (FF, EMBED))
    p["ffn_b1"] = n(ks[9], (1, FF), 0.01)
    p["ffn_w2"] = n(ks[10], (EMBED, FF))
    p["ffn_b2"] = n(ks[11], (1, EMBED), 0.01)
    p["ln2_g"] = jnp.ones((1, EMBED), jnp.float32) + n(ks[12], (1, EMBED), 0.01)
    p["ln2_b"] = n(ks[13], (1, EMBED), 0.01)
    p["note_w"] = n(ks[14], (NOTES_VOCAB, EMBED))
    p["note_b"] = n(ks[15], (1, NOTES_VOCAB), 0.01)
    p["dur_w"] = n(ks[16], (DUR_VOCAB, EMBED))
    p["dur_b"] = n(ks[17], (1, DUR_VOCAB), 0.01)
    return p


def embed_inputs(notes, durations, params):
    # TODO(synk): embedding gather stays in JAX (data-dependent gather has no
    # cheap rectangular BlockSpec form at this tiny size).
    pe = sine_pos_enc(S, EMBED // 2)
    note_emb = params["note_table"][notes] + pe[None]        # (B, S, E/2)
    dur_emb = params["dur_table"][durations] + pe[None]      # (B, S, E/2)
    return jnp.concatenate([note_emb, dur_emb], axis=-1)     # (B, S, E)


def reference_forward(x, p):
    """Pure-JAX mirror of the PyTorch forward (eval mode) for verification."""
    B_, S_, E_ = x.shape
    qkv = x @ p["in_proj_w"].T + p["in_proj_b"][0]
    q, k, v = jnp.split(qkv, 3, axis=-1)

    def heads(t):
        return t.reshape(B_, S_, HEADS, HEAD_DIM).transpose(0, 2, 1, 3)

    qh, kh, vh = heads(q), heads(k), heads(v)
    s = jnp.einsum("bhqd,bhkd->bhqk", qh / np.sqrt(HEAD_DIM), kh)
    mask = jnp.triu(jnp.ones((S_, S_), bool), 1)
    s = jnp.where(mask[None, None], -jnp.inf, s)
    prob = jax.nn.softmax(s, axis=-1)
    attn_w = prob.mean(axis=1)
    ctx = jnp.einsum("bhqk,bhkd->bhqd", prob, vh).transpose(0, 2, 1, 3).reshape(B_, S_, E_)
    attn_out = ctx @ p["out_proj_w"].T + p["out_proj_b"][0]
    x1 = _layernorm(x + attn_out, p["ln1_g"][0], p["ln1_b"][0])
    h1 = jax.nn.relu(x1 @ p["ffn_w1"].T + p["ffn_b1"][0])
    ffn = h1 @ p["ffn_w2"].T + p["ffn_b2"][0]
    x2 = _layernorm(x1 + ffn, p["ln2_g"][0], p["ln2_b"][0])
    nl = x2 @ p["note_w"].T + p["note_b"][0]
    dl = x2 @ p["dur_w"].T + p["dur_b"][0]
    return nl, dl, attn_w


if __name__ == "__main__":
    key = jax.random.PRNGKey(0)
    k_notes, k_dur, k_par = jax.random.split(key, 3)
    notes = jax.random.randint(k_notes, (B, S), 0, NOTES_VOCAB)
    durations = jax.random.randint(k_dur, (B, S), 0, DUR_VOCAB)
    params = init_params(k_par)

    emb = embed_inputs(notes, durations, params)             # (B, S, E)
    note_logits, dur_logits, attn_w = transformer_forward(emb, params)
    jax.block_until_ready((note_logits, dur_logits, attn_w))

    ref_nl, ref_dl, ref_aw = reference_forward(emb, params)
    np.testing.assert_allclose(np.asarray(note_logits), np.asarray(ref_nl),
                               rtol=2e-3, atol=2e-3)
    np.testing.assert_allclose(np.asarray(dur_logits), np.asarray(ref_dl),
                               rtol=2e-3, atol=2e-3)
    np.testing.assert_allclose(np.asarray(attn_w), np.asarray(ref_aw),
                               rtol=2e-3, atol=2e-3)
    print("KERNEL_OK")
</pallas_src>

<mosaic_0001>
module attributes {stable_mosaic.version = 11 : i64} {
  func.func @kernel(%arg0: i32, %arg1: memref<16x32xf32, #tpu.memory_space<vmem>>, %arg2: memref<32x512xf32, #tpu.memory_space<vmem>>, %arg3: memref<64x32xf32, #tpu.memory_space<vmem>>, %arg4: memref<9x128xf32, #tpu.memory_space<vmem>>, %arg5: memref<64x64xf32, #tpu.memory_space<vmem>>, %arg6: memref<64x128xf32, #tpu.memory_space<vmem>>, %arg7: memref<16x128xf32, #tpu.memory_space<vmem>>, %arg8: memref<16x128xf32, #tpu.memory_space<vmem>>) attributes {dimension_semantics = [#tpu.dimension_semantics<arbitrary>], iteration_bounds = array<i64: 1>, scalar_prefetch = 0 : i64, scratch_operands = 0 : i64, tpu.core_type = #tpu.core_type<tc>, window_params = [{pipeline_mode = #tpu.pipeline_mode<synchronous>, transform_indices = @transform_0, window_bounds = array<i64: 16, 32>}, {pipeline_mode = #tpu.pipeline_mode<synchronous>, transform_indices = @transform_1, window_bounds = array<i64: 32, 512>}, {pipeline_mode = #tpu.pipeline_mode<synchronous>, transform_indices = @transform_2, window_bounds = array<i64: 64, 32>}, {pipeline_mode = #tpu.pipeline_mode<synchronous>, transform_indices = @transform_3, window_bounds = array<i64: 9, 128>}, {pipeline_mode = #tpu.pipeline_mode<synchronous>, transform_indices = @transform_4, window_bounds = array<i64: 64, 64>}, {pipeline_mode = #tpu.pipeline_mode<synchronous>, transform_indices = @transform_5, window_bounds = array<i64: 64, 128>}, {pipeline_mode = #tpu.pipeline_mode<synchronous>, transform_indices = @transform_6, window_bounds = array<i64: 16, 128>}, {pipeline_mode = #tpu.pipeline_mode<synchronous>, transform_indices = @transform_7, window_bounds = array<i64: 16, 128>}]} {
    %c0 = arith.constant 0 : index
    %c0_0 = arith.constant 0 : index
    %0 = vector.load %arg1[%c0, %c0_0] : memref<16x32xf32, #tpu.memory_space<vmem>>, vector<16x32xf32>
    %c0_1 = arith.constant 0 : index
    %c0_2 = arith.constant 0 : index
    %1 = vector.load %arg2[%c0_1, %c0_2] : memref<32x512xf32, #tpu.memory_space<vmem>>, vector<32x96xf32>
    %c0_3 = arith.constant 0 : index
    %c128 = arith.constant 128 : index
    %2 = vector.load %arg2[%c0_3, %c128] : memref<32x512xf32, #tpu.memory_space<vmem>>, vector<32x32xf32>
    %c0_4 = arith.constant 0 : index
    %c256 = arith.constant 256 : index
    %3 = vector.load %arg2[%c0_4, %c256] : memref<32x512xf32, #tpu.memory_space<vmem>>, vector<32x64xf32>
    %c0_5 = arith.constant 0 : index
    %c384 = arith.constant 384 : index
    %4 = vector.load %arg2[%c0_5, %c384] : memref<32x512xf32, #tpu.memory_space<vmem>>, vector<32x128xf32>
    %c0_6 = arith.constant 0 : index
    %c0_7 = arith.constant 0 : index
    %5 = vector.load %arg3[%c0_6, %c0_7] : memref<64x32xf32, #tpu.memory_space<vmem>>, vector<64x32xf32>
    %c0_8 = arith.constant 0 : index
    %c0_9 = arith.constant 0 : index
    %6 = vector.load %arg4[%c0_8, %c0_9] : memref<9x128xf32, #tpu.memory_space<vmem>>, vector<1x96xf32>
    %c1 = arith.constant 1 : index
    %c0_10 = arith.constant 0 : index
    %7 = vector.load %arg4[%c1, %c0_10] : memref<9x128xf32, #tpu.memory_space<vmem>>, vector<1x32xf32>
    %c2 = arith.constant 2 : index
    %c0_11 = arith.constant 0 : index
    %8 = vector.load %arg4[%c2, %c0_11] : memref<9x128xf32, #tpu.memory_space<vmem>>, vector<1x32xf32>
    %c3 = arith.constant 3 : index
    %c0_12 = arith.constant 0 : index
    %9 = vector.load %arg4[%c3, %c0_12] : memref<9x128xf32, #tpu.memory_space<vmem>>, vector<1x32xf32>
    %c4 = arith.constant 4 : index
    %c0_13 = arith.constant 0 : index
    %10 = vector.load %arg4[%c4, %c0_13] : memref<9x128xf32, #tpu.memory_space<vmem>>, vector<1x64xf32>
    %c5 = arith.constant 5 : index
    %c0_14 = arith.constant 0 : index
    %11 = vector.load %arg4[%c5, %c0_14] : memref<9x128xf32, #tpu.memory_space<vmem>>, vector<1x32xf32>
    %c6 = arith.constant 6 : index
    %c0_15 = arith.constant 0 : index
    %12 = vector.load %arg4[%c6, %c0_15] : memref<9x128xf32, #tpu.memory_space<vmem>>, vector<1x32xf32>
    %c7 = arith.constant 7 : index
    %c0_16 = arith.constant 0 : index
    %13 = vector.load %arg4[%c7, %c0_16] : memref<9x128xf32, #tpu.memory_space<vmem>>, vector<1x32xf32>
    %c8 = arith.constant 8 : index
    %c0_17 = arith.constant 0 : index
    %14 = vector.load %arg4[%c8, %c0_17] : memref<9x128xf32, #tpu.memory_space<vmem>>, vector<1x128xf32>
    %cst = arith.constant dense<0.000000e+00> : vector<16x96xf32>
    %15 = tpu.matmul %0, %1, %cst {dimension_numbers = #tpu.dot_dimension_numbers<[1], [0], [0], [1], [0, 0, 1, 1], [], []>} : vector<16x32xf32>, vector<32x96xf32>, vector<16x96xf32> -> vector<16x96xf32>
    %16 = vector.broadcast %6 : vector<1x96xf32> to vector<16x96xf32>
    %17 = arith.addf %15, %16 : vector<16x96xf32>
    %18 = vector.extract_strided_slice %17 {offsets = [0, 0], sizes = [16, 8], strides = [1, 1]} : vector<16x96xf32> to vector<16x8xf32>
    %19 = vector.extract_strided_slice %17 {offsets = [0, 8], sizes = [16, 8], strides = [1, 1]} : vector<16x96xf32> to vector<16x8xf32>
    %20 = vector.extract_strided_slice %17 {offsets = [0, 16], sizes = [16, 8], strides = [1, 1]} : vector<16x96xf32> to vector<16x8xf32>
    %21 = vector.extract_strided_slice %17 {offsets = [0, 24], sizes = [16, 8], strides = [1, 1]} : vector<16x96xf32> to vector<16x8xf32>
    %22 = tpu.concatenate %18, %19, %20, %21 in 0 : vector<16x8xf32>, vector<16x8xf32>, vector<16x8xf32>, vector<16x8xf32> -> vector<64x8xf32>
    %cst_18 = arith.constant 0.353553385 : f32
    %23 = vector.broadcast %cst_18 : f32 to vector<64x8xf32>
    %24 = arith.mulf %22, %23 : vector<64x8xf32>
    %25 = vector.extract_strided_slice %17 {offsets = [0, 32], sizes = [16, 8], strides = [1, 1]} : vector<16x96xf32> to vector<16x8xf32>
    %26 = vector.extract_strided_slice %17 {offsets = [0, 40], sizes = [16, 8], strides = [1, 1]} : vector<16x96xf32> to vector<16x8xf32>
    %27 = vector.extract_strided_slice %17 {offsets = [0, 48], sizes = [16, 8], strides = [1, 1]} : vector<16x96xf32> to vector<16x8xf32>
    %28 = vector.extract_strided_slice %17 {offsets = [0, 56], sizes = [16, 8], strides = [1, 1]} : vector<16x96xf32> to vector<16x8xf32>
    %29 = tpu.concatenate %25, %26, %27, %28 in 0 : vector<16x8xf32>, vector<16x8xf32>, vector<16x8xf32>, vector<16x8xf32> -> vector<64x8xf32>
    %30 = vector.extract_strided_slice %17 {offsets = [0, 64], sizes = [16, 8], strides = [1, 1]} : vector<16x96xf32> to vector<16x8xf32>
    %31 = vector.extract_strided_slice %17 {offsets = [0, 72], sizes = [16, 8], strides = [1, 1]} : vector<16x96xf32> to vector<16x8xf32>
    %32 = vector.extract_strided_slice %17 {offsets = [0, 80], sizes = [16, 8], strides = [1, 1]} : vector<16x96xf32> to vector<16x8xf32>
    %33 = vector.extract_strided_slice %17 {offsets = [0, 88], sizes = [16, 8], strides = [1, 1]} : vector<16x96xf32> to vector<16x8xf32>
    %34 = tpu.concatenate %30, %31, %32, %33 in 0 : vector<16x8xf32>, vector<16x8xf32>, vector<16x8xf32>, vector<16x8xf32> -> vector<64x8xf32>
    %cst_19 = arith.constant dense<0.000000e+00> : vector<64x64xf32>
    %35 = tpu.matmul %24, %29, %cst_19 {dimension_numbers = #tpu.dot_dimension_numbers<[1], [1], [0], [0], [0, 0, 1, 0], [], []>} : vector<64x8xf32>, vector<64x8xf32>, vector<64x64xf32> -> vector<64x64xf32>
    %c0_20 = arith.constant 0 : index
    %c0_21 = arith.constant 0 : index
    %36 = vector.load %arg5[%c0_20, %c0_21] : memref<64x64xf32, #tpu.memory_space<vmem>>, vector<64x64xf32>
    %37 = arith.addf %35, %36 : vector<64x64xf32>
    %cst_22 = arith.constant dense<0xFF800000> : vector<64xf32>
    %38 = vector.multi_reduction <maximumf>, %37, %cst_22 [1] : vector<64x64xf32> to vector<64xf32>
    %39 = vector.shape_cast %38 : vector<64xf32> to vector<64x1xf32>
    %40 = vector.broadcast %39 : vector<64x1xf32> to vector<64x64xf32>
    %41 = arith.subf %37, %40 : vector<64x64xf32>
    %42 = math.exp %41 : vector<64x64xf32>
    %cst_23 = arith.constant dense<0.000000e+00> : vector<64xf32>
    %43 = vector.multi_reduction <add>, %42, %cst_23 [1] : vector<64x64xf32> to vector<64xf32>
    %44 = vector.shape_cast %43 : vector<64xf32> to vector<64x1xf32>
    %45 = tpu.reciprocal %44 {approx = true} : vector<64x1xf32> -> vector<64x1xf32>
    %46 = vector.broadcast %45 : vector<64x1xf32> to vector<64x64xf32>
    %47 = arith.mulf %42, %46 : vector<64x64xf32>
    %cst_24 = arith.constant dense<0.000000e+00> : vector<64x8xf32>
    %48 = tpu.matmul %47, %34, %cst_24 {dimension_numbers = #tpu.dot_dimension_numbers<[1], [0], [0], [1], [0, 0, 1, 1], [], []>} : vector<64x64xf32>, vector<64x8xf32>, vector<64x8xf32> -> vector<64x8xf32>
    %49 = vector.extract_strided_slice %48 {offsets = [0, 0], sizes = [16, 8], strides = [1, 1]} : vector<64x8xf32> to vector<16x8xf32>
    %50 = vector.extract_strided_slice %48 {offsets = [16, 0], sizes = [16, 8], strides = [1, 1]} : vector<64x8xf32> to vector<16x8xf32>
    %51 = vector.extract_strided_slice %48 {offsets = [32, 0], sizes = [16, 8], strides = [1, 1]} : vector<64x8xf32> to vector<16x8xf32>
    %52 = vector.extract_strided_slice %48 {offsets = [48, 0], sizes = [16, 8], strides = [1, 1]} : vector<64x8xf32> to vector<16x8xf32>
    %53 = tpu.concatenate %49, %50, %51, %52 in 1 : vector<16x8xf32>, vector<16x8xf32>, vector<16x8xf32>, vector<16x8xf32> -> vector<16x32xf32>
    %cst_25 = arith.constant dense<0.000000e+00> : vector<16x32xf32>
    %54 = tpu.matmul %53, %2, %cst_25 {dimension_numbers = #tpu.dot_dimension_numbers<[1], [0], [0], [1], [0, 0, 1, 1], [], []>} : vector<16x32xf32>, vector<32x32xf32>, vector<16x32xf32> -> vector<16x32xf32>
    %55 = vector.broadcast %7 : vector<1x32xf32> to vector<16x32xf32>
    %56 = arith.addf %54, %55 : vector<16x32xf32>
    %57 = arith.addf %0, %56 : vector<16x32xf32>
    %cst_26 = arith.constant dense<0.000000e+00> : vector<16xf32>
    %58 = vector.multi_reduction <add>, %57, %cst_26 [1] : vector<16x32xf32> to vector<16xf32>
    %59 = vector.shape_cast %58 : vector<16xf32> to vector<16x1xf32>
    %cst_27 = arith.constant 3.200000e+01 : f32
    %60 = vector.broadcast %cst_27 : f32 to vector<16x1xf32>
    %61 = arith.divf %59, %60 : vector<16x1xf32>
    %62 = vector.broadcast %61 : vector<16x1xf32> to vector<16x32xf32>
    %63 = arith.subf %57, %62 : vector<16x32xf32>
    %64 = arith.mulf %63, %63 : vector<16x32xf32>
    %cst_28 = arith.constant dense<0.000000e+00> : vector<16xf32>
    %65 = vector.multi_reduction <add>, %64, %cst_28 [1] : vector<16x32xf32> to vector<16xf32>
    %66 = vector.shape_cast %65 : vector<16xf32> to vector<16x1xf32>
    %cst_29 = arith.constant 3.200000e+01 : f32
    %67 = vector.broadcast %cst_29 : f32 to vector<16x1xf32>
    %68 = arith.divf %66, %67 : vector<16x1xf32>
    %69 = vector.broadcast %61 : vector<16x1xf32> to vector<16x32xf32>
    %70 = arith.subf %57, %69 : vector<16x32xf32>
    %cst_30 = arith.constant 9.99999974E-6 : f32
    %71 = vector.broadcast %cst_30 : f32 to vector<16x1xf32>
    %72 = arith.addf %68, %71 : vector<16x1xf32>
    %73 = math.rsqrt %72 : vector<16x1xf32>
    %74 = vector.broadcast %73 : vector<16x1xf32> to vector<16x32xf32>
    %75 = arith.mulf %70, %74 : vector<16x32xf32>
    %76 = vector.broadcast %8 : vector<1x32xf32> to vector<16x32xf32>
    %77 = arith.mulf %75, %76 : vector<16x32xf32>
    %78 = vector.broadcast %9 : vector<1x32xf32> to vector<16x32xf32>
    %79 = arith.addf %77, %78 : vector<16x32xf32>
    %cst_31 = arith.constant dense<0.000000e+00> : vector<16x64xf32>
    %80 = tpu.matmul %79, %3, %cst_31 {dimension_numbers = #tpu.dot_dimension_numbers<[1], [0], [0], [1], [0, 0, 1, 1], [], []>} : vector<16x32xf32>, vector<32x64xf32>, vector<16x64xf32> -> vector<16x64xf32>
    %81 = vector.broadcast %10 : vector<1x64xf32> to vector<16x64xf32>
    %82 = arith.addf %80, %81 : vector<16x64xf32>
    %cst_32 = arith.constant 0.000000e+00 : f32
    %83 = vector.broadcast %cst_32 : f32 to vector<16x64xf32>
    %84 = arith.maximumf %82, %83 : vector<16x64xf32>
    %cst_33 = arith.constant dense<0.000000e+00> : vector<16x32xf32>
    %85 = tpu.matmul %84, %5, %cst_33 {dimension_numbers = #tpu.dot_dimension_numbers<[1], [0], [0], [1], [0, 0, 1, 1], [], []>} : vector<16x64xf32>, vector<64x32xf32>, vector<16x32xf32> -> vector<16x32xf32>
    %86 = vector.broadcast %11 : vector<1x32xf32> to vector<16x32xf32>
    %87 = arith.addf %85, %86 : vector<16x32xf32>
    %88 = arith.addf %79, %87 : vector<16x32xf32>
    %cst_34 = arith.constant dense<0.000000e+00> : vector<16xf32>
    %89 = vector.multi_reduction <add>, %88, %cst_34 [1] : vector<16x32xf32> to vector<16xf32>
    %90 = vector.shape_cast %89 : vector<16xf32> to vector<16x1xf32>
    %cst_35 = arith.constant 3.200000e+01 : f32
    %91 = vector.broadcast %cst_35 : f32 to vector<16x1xf32>
    %92 = arith.divf %90, %91 : vector<16x1xf32>
    %93 = vector.broadcast %92 : vector<16x1xf32> to vector<16x32xf32>
    %94 = arith.subf %88, %93 : vector<16x32xf32>
    %95 = arith.mulf %94, %94 : vector<16x32xf32>
    %cst_36 = arith.constant dense<0.000000e+00> : vector<16xf32>
    %96 = vector.multi_reduction <add>, %95, %cst_36 [1] : vector<16x32xf32> to vector<16xf32>
    %97 = vector.shape_cast %96 : vector<16xf32> to vector<16x1xf32>
    %cst_37 = arith.constant 3.200000e+01 : f32
    %98 = vector.broadcast %cst_37 : f32 to vector<16x1xf32>
    %99 = arith.divf %97, %98 : vector<16x1xf32>
    %100 = vector.broadcast %92 : vector<16x1xf32> to vector<16x32xf32>
    %101 = arith.subf %88, %100 : vector<16x32xf32>
    %cst_38 = arith.constant 9.99999974E-6 : f32
    %102 = vector.broadcast %cst_38 : f32 to vector<16x1xf32>
    %103 = arith.addf %99, %102 : vector<16x1xf32>
    %104 = math.rsqrt %103 : vector<16x1xf32>
    %105 = vector.broadcast %104 : vector<16x1xf32> to vector<16x32xf32>
    %106 = arith.mulf %101, %105 : vector<16x32xf32>
    %107 = vector.broadcast %12 : vector<1x32xf32> to vector<16x32xf32>
    %108 = arith.mulf %106, %107 : vector<16x32xf32>
    %109 = vector.broadcast %13 : vector<1x32xf32> to vector<16x32xf32>
    %110 = arith.addf %108, %109 : vector<16x32xf32>
    %cst_39 = arith.constant dense<0.000000e+00> : vector<16x128xf32>
    %111 = tpu.matmul %110, %4, %cst_39 {dimension_numbers = #tpu.dot_dimension_numbers<[1], [0], [0], [1], [0, 0, 1, 1], [], []>} : vector<16x32xf32>, vector<32x128xf32>, vector<16x128xf32> -> vector<16x128xf32>
    %112 = vector.broadcast %14 : vector<1x128xf32> to vector<16x128xf32>
    %113 = arith.addf %111, %112 : vector<16x128xf32>
    %c0_40 = arith.constant 0 : index
    %c0_41 = arith.constant 0 : index
    %114 = vector.load %arg7[%c0_40, %c0_41] : memref<16x128xf32, #tpu.memory_space<vmem>>, vector<16x128xf32>
    tpu.vector_store %arg7[%c0_40, %c0_41], %113 {strides = array<i32>} : memref<16x128xf32, #tpu.memory_space<vmem>>, vector<16x128xf32>,
    %115 = vector.extract_strided_slice %47 {offsets = [0, 0], sizes = [16, 64], strides = [1, 1]} : vector<64x64xf32> to vector<16x64xf32>
    %116 = vector.extract_strided_slice %47 {offsets = [16, 0], sizes = [16, 64], strides = [1, 1]} : vector<64x64xf32> to vector<16x64xf32>
    %117 = arith.addf %115, %116 : vector<16x64xf32>
    %118 = vector.extract_strided_slice %47 {offsets = [32, 0], sizes = [16, 64], strides = [1, 1]} : vector<64x64xf32> to vector<16x64xf32>
    %119 = arith.addf %117, %118 : vector<16x64xf32>
    %120 = vector.extract_strided_slice %47 {offsets = [48, 0], sizes = [16, 64], strides = [1, 1]} : vector<64x64xf32> to vector<16x64xf32>
    %121 = arith.addf %119, %120 : vector<16x64xf32>
    %c0_42 = arith.constant 0 : index
    %c0_43 = arith.constant 0 : index
    %122 = vector.load %arg6[%c0_42, %c0_43] : memref<64x128xf32, #tpu.memory_space<vmem>>, vector<64x128xf32>
    %cst_44 = arith.constant dense<0.000000e+00> : vector<16x128xf32>
    %123 = tpu.matmul %121, %122, %cst_44 {dimension_numbers = #tpu.dot_dimension_numbers<[1], [0], [0], [1], [0, 0, 1, 1], [], []>} : vector<16x64xf32>, vector<64x128xf32>, vector<16x128xf32> -> vector<16x128xf32>
    %c0_45 = arith.constant 0 : index
    %c0_46 = arith.constant 0 : index
    %124 = vector.load %arg8[%c0_45, %c0_46] : memref<16x128xf32, #tpu.memory_space<vmem>>, vector<16x128xf32>
    tpu.vector_store %arg8[%c0_45, %c0_46], %123 {strides = array<i32>} : memref<16x128xf32, #tpu.memory_space<vmem>>, vector<16x128xf32>,
    return
  }
  func.func @transform_0(%arg0: i32) -> (i32, i32) {
    %c0_i32 = arith.constant 0 : i32
    %c0_i32_0 = arith.constant 0 : i32
    %c0_i32_1 = arith.constant 0 : i32
    return %c0_i32, %c0_i32_0 : i32, i32
  }
  func.func @transform_1(%arg0: i32) -> (i32, i32) {
    %c0_i32 = arith.constant 0 : i32
    %c0_i32_0 = arith.constant 0 : i32
    %c0_i32_1 = arith.constant 0 : i32
    return %c0_i32, %c0_i32_0 : i32, i32
  }
  func.func @transform_2(%arg0: i32) -> (i32, i32) {
    %c0_i32 = arith.constant 0 : i32
    %c0_i32_0 = arith.constant 0 : i32
    %c0_i32_1 = arith.constant 0 : i32
    return %c0_i32, %c0_i32_0 : i32, i32
  }
  func.func @transform_3(%arg0: i32) -> (i32, i32) {
    %c0_i32 = arith.constant 0 : i32
    %c0_i32_0 = arith.constant 0 : i32
    %c0_i32_1 = arith.constant 0 : i32
    return %c0_i32, %c0_i32_0 : i32, i32
  }
  func.func @transform_4(%arg0: i32) -> (i32, i32) {
    %c0_i32 = arith.constant 0 : i32
    %c0_i32_0 = arith.constant 0 : i32
    %c0_i32_1 = arith.constant 0 : i32
    return %c0_i32, %c0_i32_0 : i32, i32
  }
  func.func @transform_5(%arg0: i32) -> (i32, i32) {
    %c0_i32 = arith.constant 0 : i32
    %c0_i32_0 = arith.constant 0 : i32
    %c0_i32_1 = arith.constant 0 : i32
    return %c0_i32, %c0_i32_0 : i32, i32
  }
  func.func @transform_6(%arg0: i32) -> (i32, i32) {
    %c0_i32 = arith.constant 0 : i32
    %c0_i32_0 = arith.constant 0 : i32
    %c0_i32_1 = arith.constant 0 : i32
    return %c0_i32, %c0_i32_0 : i32, i32
  }
  func.func @transform_7(%arg0: i32) -> (i32, i32) {
    %c0_i32 = arith.constant 0 : i32
    %c0_i32_0 = arith.constant 0 : i32
    %c0_i32_1 = arith.constant 0 : i32
    return %c0_i32, %c0_i32_0 : i32, i32
  }
}

</mosaic_0001>

<bundles_post_ra>
// kernel: tpu_custom_call.1
= control target key start
LH: loop header
LB: loop body
LE: loop exit
PB: predicated region body
PF: predicated region fallthrough
CT: control target
= control target key end

     0   :  { %13 = vsyncpa [#allocation3], 0  ;;  %s1344_s0 = inlined_call_operand.vmem [shape: f32[16,32], index: 0, kind: input, shape index: {}]   ;;  %s1345_s1 = inlined_call_operand.hbm [shape: f32[32,512], index: 1, kind: input, shape index: {}]   ;;  %s1346_s2 = inlined_call_operand.vmem [shape: f32[64,32], index: 2, kind: input, shape index: {}]   ;;  %s1347_s3 = inlined_call_operand.vmem [shape: f32[9,128], index: 3, kind: input, shape index: {}]   ;;  %s1348_s4 = inlined_call_operand.vmem [shape: f32[64,64], index: 4, kind: input, shape index: {}]   ;;  %s1349_s5 = inlined_call_operand.hbm [shape: f32[64,128], index: 5, kind: input, shape index: {}]   ;;  %s1350_s6 = inlined_call_operand.hbm [shape: f32[16,128], index: 6, kind: output, shape index: {0}]   ;;  %s1351_s7 = inlined_call_operand.hbm [shape: f32[16,128], index: 7, kind: output, shape index: {1}]  }
   0x1   :  { %14 = vsyncpa [#allocation6], 0 }
   0x2   :  { %15 = vsyncpa [#allocation4], 0 }
   0x3   :  { %16 = vsyncpa [#allocation9], 0  ;;  %s23_s26 = sshll.u32 %s1345_s1, 4  ;;  %s1022_s27 = smov [#allocation2]   ;;  %s24_s26 = int_to_ptr.hbm [resolvable:$true] %s23_s26 }
   0x4   :  { %s25_s28 = sshll.u32 %s1022_s27, 4  ;;  %s42_s8 = sshll.u32 %s1349_s5, 4  ;;  %s26_s28 = int_to_ptr.vmem [resolvable:$true] %s25_s28  ;;  %s43_s8 = int_to_ptr.hbm [resolvable:$true] %s42_s8 }
   0x5   :  { %s1023_s9 = smov 512   ;;  %s1024_s10 = smov 32  }
   0x6   :  { %31 = dma.hbm_to_vmem [thread:$0]  %s24_s26, 2048, %s26_s28, [#allocation3], %s1023_s9, %s1023_s9, %s1024_s10  }
   0x7   :  { %s1025_s11 = smov [#allocation5]   ;;  %s1026_s13 = smov 128  }
   0x8   :  { %s44_s12 = sshll.u32 %s1025_s11, 4  ;;  %s1027_s14 = smov 8   ;;  %s45_s12 = int_to_ptr.vmem [resolvable:$true] %s44_s12 }
   0x9   :  { %50 = dma.hbm_to_vmem [thread:$0]  %s43_s8, 1024, %s45_s12, [#allocation6], %s1026_s13, %s1026_s13, %s1027_s14  }
   0xa   :  { %1014 = dma.done.wait [#allocation3], 2048  }
   0xb   :  { %1015 = vsyncadd [#allocation3], 4294965248 }
   0xc   :  { %1016 = dma.done.wait [#allocation6], 1024  }
   0xd   :  { %1017 = vsyncadd [#allocation6], 4294966272  ;;  %v64_v0 = vld [vmem:[#allocation2 + $0x60] sm:$0xff]  ;;  %vm95_vm0 = vcmask 261120   ;;  %v1097_v5 = vld [vmem:[%s1344_s0 + $0x8] sm:$0xff]  ;;  %s1028_s19 = smov 120  }
   0xe   :  { %v63_v1 = vld [vmem:[#allocation2 + $0x40] sm:$0xff]  ;;  %114 = vmatpush.msra.mxu0 %v64_v0  ;;  %s1029_s20 = smov 112   ;;  %s1030_s21 = smov 104   ;;  %vm177_vm1 = vcmask 64512   ;;  %v155_v35 = vld [vmem:[%s1348_s4 + $0x10] sm:$0xff]  ;;  %vm259_vm2 = vcmask 523264  }
   0xf   :  { %v62_v2 = vld [vmem:[#allocation2 + $0x20] sm:$0xff]  ;;  %s1032_s22 = smov 64   ;;  %v154_v42 = vld [vmem:[%s1348_s4 + $0x8] sm:$0xff]  ;;  %v156_v43 = vld [vmem:[%s1348_s4 + $0x18] sm:$0xff]  ;;  %s1034_s16 = smov 24   ;;  %vm463_vm3 = vcmask 130048  }
  0x10   :  { %v61_v3 = vld [vmem:[#allocation2] sm:$0xff]  ;;  %115 = vmatpush.msra.mxu0 %v63_v1  ;;  %v158_v54 = vld [vmem:[%s1348_s4 + $0x28] sm:$0xff]  ;;  %v159_v59 = vld [vmem:[%s1348_s4 + $0x30] sm:$0xff]  ;;  %vm466_vm4 = vcmask 195584   ;;  %s768_s24 = sshll.u32 %s1351_s7, 4  ;;  %s1037_s27 = smov [#allocation7]   ;;  %s769_s24 = int_to_ptr.hbm [resolvable:$true] %s768_s24 }
  0x11   :  { %v1090_v4 = vld [vmem:[%s1344_s0] sm:$0xff]  ;;  %s1031_s0 = smov 96   ;;  %v160_v0 = vld [vmem:[%s1348_s4 + $0x38] sm:$0xff]  ;;  %s753_s28 = sshll.u32 %s1037_s27, 4  ;;  %s754_s28 = int_to_ptr.vmem [resolvable:$true] %s753_s28 }
  0x12   :  { %116 = vmatpush.msra.mxu0 %v62_v2  ;;  %v867_v7 = vld [vmem:[%s1347_s3] ss:$0 sm:$0xff]  ;;  %s755_s8 = sshll.u32 %s1350_s6, 4  ;;  %s756_s8 = int_to_ptr.hbm [resolvable:$true] %s755_s8 }
  0x13   :  { %v153_v34 = vld [vmem:[%s1348_s4] sm:$0xff] }
  0x14   :  { %117 = vmatpush.msra.mxu0 %v61_v3  ;;  %v157_v50 = vld [vmem:[%s1348_s4 + $0x20] sm:$0xff]  ;;  %s1033_s4 = smov 16  }
  0x15   :  { %787 = vmatmul.msk.f32.vlgmr.msra.gmra.mxu0 %vm95_vm0, %v1090_v4 }
  0x1d   :  { %788 = vmatmul.msk.f32.gmra.mxu0 %vm95_vm0, %v1097_v5 }
  0x92   :  { %v119_v6 = vpop.f32.mrf.mxu0 }
  0x93   :  { %v1109_v10 = vadd.f32 %v867_v7, %v119_v6 }
  0x95   :  { %v145_v27 = vmul.f32 0.35355338, %v1109_v10 }
  0x9a   :  { %v122_v8 = vpop.f32.mrf.mxu0 }
  0x9b   :  { %v1104_v9 = vadd.f32 %v867_v7, %v122_v8 }
  0x9d   :  { %129 = vrot.lane.b32.xlu2 %v1104_v9, %s1028_s19  ;;  %135 = vrot.lane.b32.xlu1 %v1104_v9, %s1029_s20  ;;  %v146_v29 = vmul.f32 0.35355338, %v1104_v9  ;;  %v862_v63 = vpack.i.bf16 %v1109_v10, %v1104_v9 }
  0x9e   :  { %141 = vrot.lane.b32.xlu0 %v1104_v9, %s1030_s21 }
  0xa5   :  { %127 = vrot.lane.b32.xlu2 %v1109_v10, %s1028_s19  ;;  %133 = vrot.lane.b32.xlu1 %v1109_v10, %s1029_s20 }
  0xa6   :  { %139 = vrot.lane.b32.xlu0 %v1109_v10, %s1030_s21  ;;  %s1036_s21 = smov [#allocation8]  }
  0xf7   :  { %v1114_v11 = vpop.permute.xlu2 %129 }
  0xf8   :  { %v148_v28 = vmul.f32 0.35355338, %v1114_v11 }
  0xff   :  { %v1119_v14 = vpop.permute.xlu2 %127 }
 0x100   :  { %v147_v26 = vmul.f32 0.35355338, %v1119_v14 }
 0x10f   :  { %v136_v12 = vpop.permute.xlu1 %135 }
 0x110   :  { %v1116_v13 = vpop.permute.xlu0 %141  ;;  %171 = vrot.lane.b32.xlu2 %v136_v12, %s1031_s0  ;;  %v150_v31 = vmul.f32 0.35355338, %v136_v12 }
 0x111   :  { %175 = vrot.lane.b32.xlu0 %v1116_v13, %s1031_s0  ;;  %v152_v33 = vmul.f32 0.35355338, %v1116_v13 }
 0x117   :  { %v134_v15 = vpop.permute.xlu1 %133 }
 0x118   :  { %v1121_v16 = vpop.permute.xlu0 %139  ;;  %165 = vrot.lane.b32.xlu2 %v1119_v14, %s1031_s0  ;;  %v852_v17 = vpack.i.bf16 %v134_v15, %v136_v12  ;;  %v149_v30 = vmul.f32 0.35355338, %v134_v15 }
 0x119   :  { %169 = vrot.lane.b32.xlu0 %v134_v15, %s1031_s0  ;;  %173 = vrot.lane.b32.xlu1 %v1121_v16, %s1031_s0  ;;  %v151_v32 = vmul.f32 0.35355338, %v1121_v16  ;;  %v847_v57 = vpack.i.bf16 %v1121_v16, %v1116_v13 }
 0x121   :  { %163 = vrot.lane.b32.xlu0 %v1104_v9, %s1031_s0  ;;  %167 = vrot.lane.b32.xlu1 %v1114_v11, %s1031_s0 }
 0x129   :  { %853 = vrot.lane.b32.xlu0 %v852_v17, %s1032_s22  ;;  %161 = vrot.lane.b32.xlu1 %v1109_v10, %s1031_s0  ;;  %s766_s0 = sshll.u32 %s1036_s21, 4  ;;  %s767_s0 = int_to_ptr.vmem [resolvable:$true] %s766_s0 }
 0x16a   :  { %v172_v20 = vpop.permute.xlu2 %171 }
 0x172   :  { %v166_v23 = vpop.permute.xlu2 %165 }
 0x183   :  { %v176_v18 = vpop.permute.xlu0 %175 }
 0x184   :  { %789 = vmatpush.xpose.msk.msrb.mxu0 %vm177_vm1, %v176_v18  ;;  %823 = vmatpush.xpose.msk.msra.mxu1 %vm177_vm1, %v176_v18 }
 0x18b   :  { %v174_v19 = vpop.permute.xlu1 %173  ;;  %v170_v21 = vpop.permute.xlu0 %169 }
 0x18c   :  { %790 = vmatpush.xpose.msk.msrb.mxu0 %vm177_vm1, %v174_v19  ;;  %824 = vmatpush.xpose.msk.msra.mxu1 %vm177_vm1, %v174_v19 }
 0x190   :  { %791 = vmatpush.xpose.msk.msrb.mxu0 %vm177_vm1, %v172_v20  ;;  %825 = vmatpush.xpose.msk.msra.mxu1 %vm177_vm1, %v172_v20 }
 0x193   :  { %v168_v22 = vpop.permute.xlu1 %167  ;;  %v164_v24 = vpop.permute.xlu0 %163 }
 0x194   :  { %792 = vmatpush.xpose.msk.msrb.mxu0 %vm177_vm1, %v170_v21  ;;  %826 = vmatpush.xpose.msk.msra.mxu1 %vm177_vm1, %v170_v21 }
 0x198   :  { %793 = vmatpush.xpose.msk.msrb.mxu0 %vm177_vm1, %v168_v22  ;;  %827 = vmatpush.xpose.msk.msra.mxu1 %vm177_vm1, %v168_v22 }
 0x19b   :  { %v162_v25 = vpop.permute.xlu1 %161  ;;  %v854_v6 = vpop.permute.xlu0 %853 }
 0x19c   :  { %794 = vmatpush.xpose.msk.msrb.mxu0 %vm177_vm1, %v166_v23  ;;  %828 = vmatpush.xpose.msk.msra.mxu1 %vm177_vm1, %v166_v23 }
 0x1a0   :  { %795 = vmatpush.xpose.msk.msrb.mxu0 %vm177_vm1, %v164_v24  ;;  %829 = vmatpush.xpose.msk.msra.mxu1 %vm177_vm1, %v164_v24 }
 0x1a4   :  { %796 = vmatpush.xpose.msk.msrb.mxu0 %vm177_vm1, %v162_v25  ;;  %830 = vmatpush.xpose.msk.msra.mxu1 %vm177_vm1, %v162_v25 }
 0x1a7   :  { %797 = vmatmul.msk.f32.vlgmr.msrb.gmra.mxu0 %vm177_vm1, %v145_v27  ;;  %799 = vmatmul.msk.f32.vlgmr.msra.gmra.mxu1 %vm177_vm1, %v147_v26 }
 0x1af   :  { %798 = vmatmul.msk.f32.gmra.mxu0 %vm177_vm1, %v146_v29  ;;  %800 = vmatmul.msk.f32.gmra.mxu1 %vm177_vm1, %v148_v28 }
 0x1b7   :  { %801 = vmatmul.msk.f32.gmra.mxu1 %vm177_vm1, %v149_v30 }
 0x1bf   :  { %802 = vmatmul.msk.f32.gmra.mxu1 %vm177_vm1, %v150_v31 }
 0x1c7   :  { %803 = vmatmul.msk.f32.gmra.mxu1 %vm177_vm1, %v151_v32 }
 0x1cf   :  { %804 = vmatmul.msk.f32.gmra.mxu1 %vm177_vm1, %v152_v33 }
 0x224   :  { %v235_v36 = vpop.f32.mrf.mxu0  ;;  %v241_v37 = vpop.f32.mrf.mxu1 }
 0x225   :  { %v236_v38 = vadd.f32 %v235_v36, %v153_v34  ;;  %v1165_v39 = vadd.f32 %v241_v37, %v155_v35  ;;  %v855_v36 = vunpack.i.l.bf16 %v854_v6  ;;  %v856_v37 = vunpack.i.h.bf16 %v854_v6 }
 0x227   :  { %v266_v40 = vsel %vm259_vm2, %v1165_v39, -inf  ;;  %v260_v41 = vsel %vm259_vm2, %v236_v38, -inf }
 0x228   :  { %267 = vmax.xlane.f32.xlu1 %v266_v40  ;;  %261 = vmax.xlane.f32.xlu2 %v260_v41 }
 0x22c   :  { %v238_v44 = vpop.f32.mrf.mxu0  ;;  %v244_v45 = vpop.f32.mrf.mxu1 }
 0x22d   :  { %v239_v46 = vadd.f32 %v238_v44, %v154_v42  ;;  %v245_v47 = vadd.f32 %v244_v45, %v156_v43  ;;  %v857_v43 = vpack.i.bf16 %v1119_v14, %v1114_v11 }
 0x22f   :  { %v263_v48 = vsel %vm259_vm2, %v239_v46, -inf  ;;  %v269_v49 = vsel %vm259_vm2, %v245_v47, -inf }
 0x230   :  { %264 = vmax.xlane.f32.xlu0 %v263_v48  ;;  %270 = vmax.xlane.f32.xlu2 %v269_v49 }
 0x234   :  { %v247_v51 = vpop.f32.mrf.mxu1 }
 0x235   :  { %v248_v52 = vadd.f32 %v247_v51, %v157_v50 }
 0x237   :  { %v272_v53 = vsel %vm259_vm2, %v248_v52, -inf }
 0x238   :  { %273 = vmax.xlane.f32.xlu2 %v272_v53 }
 0x23c   :  { %v250_v55 = vpop.f32.mrf.mxu1 }
 0x23d   :  { %v251_v56 = vadd.f32 %v250_v55, %v158_v54 }
 0x23f   :  { %v275_v58 = vsel %vm259_vm2, %v251_v56, -inf }
 0x240   :  { %276 = vmax.xlane.f32.xlu0 %v275_v58 }
 0x241   :  { %848 = vrot.lane.b32.xlu1 %v847_v57, %s1032_s22 }
 0x244   :  { %v253_v60 = vpop.f32.mrf.mxu1 }
 0x245   :  { %v254_v61 = vadd.f32 %v253_v60, %v159_v59 }
 0x247   :  { %v278_v62 = vsel %vm259_vm2, %v254_v61, -inf }
 0x248   :  { %279 = vmax.xlane.f32.xlu2 %v278_v62 }
 0x24c   :  { %v256_v1 = vpop.f32.mrf.mxu1 }
 0x24d   :  { %v1199_v2 = vadd.f32 %v256_v1, %v160_v0 }
 0x24f   :  { %v281_v3 = vsel %vm259_vm2, %v1199_v2, -inf }
 0x254   :  { %863 = vrot.lane.b32.xlu0 %v862_v63, %s1032_s22 }
 0x26b   :  { %282 = vmax.xlane.f32.xlu1 %v281_v3 }
 0x29b   :  { %v262_v7 = vpop.xlane.xlu2 %261  ;;  %v268_v20 = vpop.xlane.xlu1 %267 }
 0x29c   :  { %v284_v8 = vsub.f32 %v236_v38, %v262_v7 }
 0x29e   :  { %v292_v12 = vmul.f32 1.442695, %v284_v8 }
 0x2a0   :  { %876 = vpow2.f32 %v292_v12 }
 0x2a3   :  { %v265_v13 = vpop.xlane.xlu0 %264  ;;  %v271_v9 = vpop.xlane.xlu2 %270 }
 0x2a4   :  { %v285_v10 = vsub.f32 %v239_v46, %v265_v13  ;;  %v287_v15 = vsub.f32 %v245_v47, %v271_v9  ;;  %v286_v47 = vsub.f32 %v1165_v39, %v268_v20 }
 0x2a6   :  { %v294_v16 = vmul.f32 1.442695, %v285_v10  ;;  %v298_v17 = vmul.f32 1.442695, %v287_v15  ;;  %v1203_v18 = vpop.eup %876  ;;  %v296_v48 = vmul.f32 1.442695, %v286_v47 }
 0x2a7   :  { %v308_v19 = vsel %vm259_vm2, %v1203_v18, 0.0 }
 0x2a8   :  { %878 = vpow2.f32 %v294_v16  ;;  %309 = vadd.xlane.f32.xlu2 %v308_v19 }
 0x2a9   :  { %880 = vpow2.f32 %v298_v17 }
 0x2ab   :  { %v274_v21 = vpop.xlane.xlu2 %273 }
 0x2ac   :  { %v288_v22 = vsub.f32 %v248_v52, %v274_v21 }
 0x2ae   :  { %v1207_v23 = vpop.eup %878  ;;  %v300_v24 = vmul.f32 1.442695, %v288_v22 }
 0x2af   :  { %v1209_v25 = vpop.eup %880  ;;  %v311_v26 = vsel %vm259_vm2, %v1207_v23, 0.0 }
 0x2b0   :  { %882 = vpow2.f32 %v300_v24  ;;  %312 = vadd.xlane.f32.xlu0 %v311_v26  ;;  %v317_v27 = vsel %vm259_vm2, %v1209_v25, 0.0 }
 0x2b1   :  { %318 = vadd.xlane.f32.xlu1 %v317_v27 }
 0x2b3   :  { %v849_v28 = vpop.permute.xlu1 %848  ;;  %v277_v29 = vpop.xlane.xlu0 %276 }
 0x2b4   :  { %v289_v30 = vsub.f32 %v251_v56, %v277_v29  ;;  %v850_v31 = vunpack.i.l.bf16 %v849_v28  ;;  %v851_v34 = vunpack.i.h.bf16 %v849_v28 }
 0x2b6   :  { %v1215_v32 = vpop.eup %882  ;;  %v302_v33 = vmul.f32 1.442695, %v289_v30  ;;  %404 = vmatpush.msra.mxu2 %v850_v31 }
 0x2b7   :  { %v320_v35 = vsel %vm259_vm2, %v1215_v32, 0.0 }
 0x2b8   :  { %884 = vpow2.f32 %v302_v33  ;;  %405 = vmatpush.msra.mxu2 %v851_v34 }
 0x2b9   :  { %321 = vadd.xlane.f32.xlu1 %v320_v35 }
 0x2ba   :  { %406 = vmatpush.msra.mxu2 %v855_v36 }
 0x2bb   :  { %v280_v38 = vpop.xlane.xlu2 %279 }
 0x2bc   :  { %v290_v40 = vsub.f32 %v254_v61, %v280_v38  ;;  %407 = vmatpush.msra.mxu2 %v856_v37  ;;  %v68_v37 = vld [vmem:[#allocation2 + $0x68] sm:$0xff] }
 0x2bd   :  { %v67_v38 = vld [vmem:[#allocation2 + $0x48] sm:$0xff]  ;;  %488 = vmatpush.msra.mxu3 %v68_v37 }
 0x2be   :  { %v885_v41 = vpop.eup %884  ;;  %v304_v42 = vmul.f32 1.442695, %v290_v40  ;;  %v66_v40 = vld [vmem:[#allocation2 + $0x28] sm:$0xff] }
 0x2bf   :  { %v323_v44 = vsel %vm259_vm2, %v885_v41, 0.0  ;;  %489 = vmatpush.msra.mxu3 %v67_v38 }
 0x2c0   :  { %886 = vpow2.f32 %v304_v42  ;;  %324 = vadd.xlane.f32.xlu0 %v323_v44  ;;  %858 = vrot.lane.b32.xlu2 %v857_v43, %s1032_s22 }
 0x2c1   :  { %888 = vpow2.f32 %v296_v48  ;;  %490 = vmatpush.msra.mxu3 %v66_v40 }
 0x2c6   :  { %v1223_v45 = vpop.eup %886  ;;  %v864_v55 = vpop.permute.xlu0 %863 }
 0x2c7   :  { %v326_v46 = vsel %vm259_vm2, %v1223_v45, 0.0  ;;  %v889_v14 = vpop.eup %888  ;;  %v865_v60 = vunpack.i.l.bf16 %v864_v55  ;;  %v866_v61 = vunpack.i.h.bf16 %v864_v55 }
 0x2c8   :  { %327 = vadd.xlane.f32.xlu1 %v326_v46  ;;  %v314_v52 = vsel %vm259_vm2, %v889_v14, 0.0 }
 0x2de   :  { %v283_v49 = vpop.xlane.xlu1 %282 }
 0x2df   :  { %v291_v50 = vsub.f32 %v1199_v2, %v283_v49 }
 0x2e1   :  { %v306_v11 = vmul.f32 1.442695, %v291_v50 }
 0x2e3   :  { %890 = vpow2.f32 %v306_v11 }
 0x2e9   :  { %v891_v51 = vpop.eup %890  ;;  %315 = vadd.xlane.f32.xlu2 %v314_v52  ;;  %v868_v52 = vld [vmem:[%s1347_s3 + $0x1] ss:$0 sm:$0xff] }
 0x2ea   :  { %v329_v53 = vsel %vm259_vm2, %v891_v51, 0.0 }
 0x2eb   :  { %330 = vadd.xlane.f32.xlu0 %v329_v53 }
 0x31b   :  { %v310_v54 = vpop.xlane.xlu2 %309 }
 0x31c   :  { %892 = vrcp.f32 %v310_v54 }
 0x322   :  { %v893_v59 = vpop.eup %892 }
 0x323   :  { %v859_v56 = vpop.permute.xlu2 %858  ;;  %v313_v58 = vpop.xlane.xlu0 %312  ;;  %v340_v62 = vmul.f32 %v893_v59, %v1203_v18 }
 0x324   :  { %v860_v39 = vunpack.i.l.bf16 %v859_v56  ;;  %v861_v57 = vunpack.i.h.bf16 %v859_v56  ;;  %894 = vrcp.f32 %v313_v58  ;;  %v319_v1 = vpop.xlane.xlu1 %318 }
 0x325   :  { %896 = vrcp.f32 %v319_v1 }
 0x326   :  { %408 = vmatpush.msra.mxu2 %v860_v39 }
 0x328   :  { %409 = vmatpush.msra.mxu2 %v861_v57 }
 0x32a   :  { %410 = vmatpush.msra.mxu2 %v865_v60  ;;  %v895_v63 = vpop.eup %894  ;;  %v1035_v60 = vmov 32.0  }
 0x32b   :  { %v341_v0 = vmul.f32 %v895_v63, %v1207_v23  ;;  %v897_v6 = vpop.eup %896 }
 0x32c   :  { %411 = vmatpush.msra.mxu2 %v866_v61  ;;  %v322_v2 = vpop.xlane.xlu1 %321  ;;  %v343_v9 = vmul.f32 %v897_v6, %v1209_v25 }
 0x32d   :  { %805 = vmatmul.msk.f32.vlgmr.msra.gmra.mxu2 %vm259_vm2, %v340_v62 }
 0x32e   :  { %v705_v17 = vadd.f32 %v343_v9, %v341_v0 }
 0x333   :  { %v325_v3 = vpop.xlane.xlu0 %324 }
 0x334   :  { %898 = vrcp.f32 %v325_v3 }
 0x335   :  { %806 = vmatmul.msk.f32.gmra.mxu2 %vm259_vm2, %v341_v0  ;;  %900 = vrcp.f32 %v322_v2 }
 0x33a   :  { %v899_v13 = vpop.eup %898 }
 0x33b   :  { %v328_v7 = vpop.xlane.xlu1 %327  ;;  %v345_v10 = vmul.f32 %v899_v13, %v885_v41  ;;  %v901_v15 = vpop.eup %900  ;;  %v65_v41 = vld [vmem:[#allocation2 + $0x8] sm:$0xff] }
 0x33c   :  { %v344_v24 = vmul.f32 %v901_v15, %v1215_v32  ;;  %491 = vmatpush.msra.mxu3 %v65_v41  ;;  %v72_v15 = vld [vmem:[#allocation2 + $0x70] sm:$0xff]  ;;  %v869_v41 = vld [vmem:[%s1347_s3 + $0x2] ss:$0 sm:$0xff] }
 0x33d   :  { %v707_v22 = vadd.f32 %v705_v17, %v345_v10  ;;  %v70_v17 = vld [vmem:[#allocation2 + $0x30] sm:$0xff] }
 0x33e   :  { %577 = vmatpush.msrb.mxu3 %v72_v15 }
 0x35c   :  { %v316_v8 = vpop.xlane.xlu2 %315 }
 0x35d   :  { %902 = vrcp.f32 %v316_v8 }
 0x35e   :  { %v331_v12 = vpop.xlane.xlu0 %330 }
 0x35f   :  { %904 = vrcp.f32 %v331_v12 }
 0x360   :  { %906 = vrcp.f32 %v328_v7 }
 0x361   :  { %908 = vrcp.f32 %v1035_v60  ;;  %v712_v60 = vld [vmem:[#allocation5 + $0x10] sm:$0xff] }
 0x363   :  { %v903_v16 = vpop.eup %902 }
 0x364   :  { %v342_v19 = vmul.f32 %v903_v16, %v889_v14  ;;  %v71_v16 = vld [vmem:[#allocation2 + $0x50] sm:$0xff] }
 0x365   :  { %v905_v18 = vpop.eup %904  ;;  %578 = vmatpush.msrb.mxu3 %v71_v16 }
 0x366   :  { %v907_v20 = vpop.eup %906  ;;  %v347_v21 = vmul.f32 %v905_v18, %v891_v51  ;;  %807 = vmatmul.msk.f32.gmra.mxu2 %vm259_vm2, %v342_v19  ;;  %v704_v23 = vadd.f32 %v342_v19, %v340_v62  ;;  %v69_v18 = vld [vmem:[#allocation2 + $0x10] sm:$0xff] }
 0x367   :  { %v346_v28 = vmul.f32 %v907_v20, %v1223_v45  ;;  %v909_v61 = vpop.eup %908  ;;  %579 = vmatpush.msrb.mxu3 %v70_v17 }
 0x368   :  { %v1238_v26 = vadd.f32 %v707_v22, %v347_v21  ;;  %v706_v27 = vadd.f32 %v704_v23, %v344_v24  ;;  %v508_v62 = vmul.f32 32.0, %v909_v61  ;;  %vm512_vm5 = vweird.f32 %v909_v61  ;;  %v84_v22 = vld [vmem:[%s1346_s2 + $0x38] sm:$0xff]  ;;  %v83_v23 = vld [vmem:[%s1346_s2 + $0x30] sm:$0xff] }
 0x369   :  { %580 = vmatpush.msrb.mxu3 %v69_v18 }
 0x36a   :  { %v1241_v25 = vadd.f32 %v706_v27, %v346_v28  ;;  %v509_v63 = vsub.f32 1.0, %v508_v62  ;;  %v710_v62 = vld [vmem:[#allocation5] sm:$0xff] }
 0x36c   :  { %v510_v0 = vmul.f32 %v909_v61, %v509_v63  ;;  %v871_v63 = vld [vmem:[%s1347_s3 + $0x4] ss:$0 sm:$0xff] }
 0x36e   :  { %808 = vmatmul.msk.f32.gmra.mxu2 %vm259_vm2, %v343_v9  ;;  %v511_v1 = vadd.f32 %v909_v61, %v510_v0 }
 0x370   :  { %v1261_v2 = vsel %vm512_vm5, %v909_v61, %v511_v1  ;;  %v711_v61 = vld [vmem:[#allocation5 + $0x8] sm:$0xff] }
 0x376   :  { %809 = vmatmul.msk.f32.gmra.mxu2 %vm259_vm2, %v344_v24  ;;  %v82_v24 = vld [vmem:[%s1346_s2 + $0x28] sm:$0xff] }
 0x37e   :  { %810 = vmatmul.msk.f32.gmra.mxu2 %vm259_vm2, %v345_v10 }
 0x386   :  { %811 = vmatmul.msk.f32.gmra.mxu2 %vm259_vm2, %v346_v28 }
 0x38e   :  { %812 = vmatmul.msk.f32.gmra.mxu2 %vm259_vm2, %v347_v21 }
 0x3b0   :  { %v413_v29 = vpop.f32.mrf.mxu2 }
 0x3b8   :  { %v416_v30 = vpop.f32.mrf.mxu2 }
 0x3e9   :  { %v419_v31 = vpop.f32.mrf.mxu2 }
 0x3ea   :  { %439 = vrot.lane.b32.xlu2 %v419_v31, %s1027_s14 }
 0x3f1   :  { %v422_v32 = vpop.f32.mrf.mxu2 }
 0x3f2   :  { %441 = vrot.lane.b32.xlu2 %v422_v32, %s1027_s14 }
 0x3f9   :  { %v425_v33 = vpop.f32.mrf.mxu2 }
 0x3fa   :  { %447 = vrot.lane.b32.xlu1 %v425_v33, %s1033_s4  ;;  %v80_v33 = vld [vmem:[%s1346_s2 + $0x18] sm:$0xff] }
 0x401   :  { %v428_v34 = vpop.f32.mrf.mxu2 }
 0x409   :  { %v431_v35 = vpop.f32.mrf.mxu2 }
 0x40a   :  { %455 = vrot.lane.b32.xlu0 %v431_v35, %s1034_s16 }
 0x411   :  { %v434_v36 = vpop.f32.mrf.mxu2 }
 0x412   :  { %449 = vrot.lane.b32.xlu0 %v428_v34, %s1033_s4  ;;  %457 = vrot.lane.b32.xlu1 %v434_v36, %s1034_s16 }
 0x444   :  { %v440_v42 = vpop.permute.xlu2 %439 }
 0x445   :  { %v461_v44 = vsel %vm177_vm1, %v413_v29, %v440_v42  ;;  %v81_v29 = vld [vmem:[%s1346_s2 + $0x20] sm:$0xff] }
 0x44c   :  { %v442_v48 = vpop.permute.xlu2 %441 }
 0x44d   :  { %v462_v49 = vsel %vm177_vm1, %v416_v30, %v442_v48 }
 0x46c   :  { %v448_v43 = vpop.permute.xlu1 %447 }
 0x46d   :  { %v464_v45 = vsel %vm463_vm3, %v461_v44, %v448_v43 }
 0x47c   :  { %v456_v46 = vpop.permute.xlu0 %455 }
 0x47d   :  { %v467_v47 = vsel %vm466_vm4, %v464_v45, %v456_v46  ;;  %v870_v45 = vld [vmem:[%s1347_s3 + $0x3] ss:$0 sm:$0xff] }
 0x47e   :  { %813 = vmatmul.msk.f32.vlgmr.msra.gmra.mxu3 %vm95_vm0, %v467_v47 }
 0x47f   :  { %605 = vmatpush.msra.mxu3 %v84_v22 }
 0x481   :  { %606 = vmatpush.msra.mxu3 %v83_v23 }
 0x483   :  { %607 = vmatpush.msra.mxu3 %v82_v24 }
 0x484   :  { %v450_v50 = vpop.permute.xlu0 %449  ;;  %v458_v11 = vpop.permute.xlu1 %457 }
 0x485   :  { %v465_v14 = vsel %vm463_vm3, %v462_v49, %v450_v50  ;;  %608 = vmatpush.msra.mxu3 %v81_v29 }
 0x486   :  { %v468_v51 = vsel %vm466_vm4, %v465_v14, %v458_v11 }
 0x487   :  { %814 = vmatmul.msk.f32.gmra.mxu3 %vm95_vm0, %v468_v51 }
 0x488   :  { %609 = vmatpush.msra.mxu3 %v80_v33  ;;  %v73_v33 = vld [vmem:[#allocation2 + $0x18] sm:$0xff] }
 0x501   :  { %v493_v53 = vpop.f32.mrf.mxu3 }
 0x502   :  { %v494_v54 = vadd.f32 %v868_v52, %v493_v53  ;;  %v79_v53 = vld [vmem:[%s1346_s2 + $0x10] sm:$0xff] }
 0x503   :  { %610 = vmatpush.msra.mxu3 %v79_v53 }
 0x504   :  { %v499_v55 = vadd.f32 %v494_v54, %v1090_v4  ;;  %v78_v54 = vld [vmem:[%s1346_s2 + $0x8] sm:$0xff] }
 0x505   :  { %611 = vmatpush.msra.mxu3 %v78_v54 }
 0x506   :  { %v501_v56 = vsel %vm95_vm0, %v499_v55, 0.0 }
 0x507   :  { %502 = vadd.xlane.f32.xlu2 %v501_v56  ;;  %v717_v56 = vld [vmem:[#allocation5 + $0x38] sm:$0xff] }
 0x50a   :  { %v496_v39 = vpop.f32.mrf.mxu3 }
 0x50b   :  { %v497_v57 = vadd.f32 %v868_v52, %v496_v39  ;;  %v716_v39 = vld [vmem:[#allocation5 + $0x30] sm:$0xff] }
 0x50d   :  { %v500_v58 = vadd.f32 %v497_v57, %v1097_v5  ;;  %v715_v57 = vld [vmem:[#allocation5 + $0x28] sm:$0xff] }
 0x50f   :  { %v504_v59 = vsel %vm95_vm0, %v500_v58, 0.0 }
 0x510   :  { %505 = vadd.xlane.f32.xlu0 %v504_v59  ;;  %v713_v59 = vld [vmem:[#allocation5 + $0x18] sm:$0xff] }
 0x57a   :  { %v503_v4 = vpop.xlane.xlu2 %502 }
 0x57b   :  { %v514_v3 = vmul.f32 %v1261_v2, %v503_v4 }
 0x57d   :  { %v516_v6 = vsub.f32 %v499_v55, %v514_v3  ;;  %v77_v55 = vld [vmem:[%s1346_s2] sm:$0xff] }
 0x57e   :  { %612 = vmatpush.msra.mxu3 %v77_v55 }
 0x57f   :  { %v518_v7 = vmul.f32 %v516_v6, %v516_v6 }
 0x581   :  { %v520_v5 = vsel %vm95_vm0, %v518_v7, 0.0 }
 0x582   :  { %521 = vadd.xlane.f32.xlu1 %v520_v5  ;;  %v872_v5 = vld [vmem:[%s1347_s3 + $0x5] ss:$0 sm:$0xff] }
 0x583   :  { %v506_v8 = vpop.xlane.xlu0 %505 }
 0x584   :  { %v515_v12 = vmul.f32 %v1261_v2, %v506_v8 }
 0x586   :  { %v517_v13 = vsub.f32 %v500_v58, %v515_v12  ;;  %v714_v58 = vld [vmem:[#allocation5 + $0x20] sm:$0xff] }
 0x588   :  { %v519_v9 = vmul.f32 %v517_v13, %v517_v13 }
 0x58a   :  { %v523_v10 = vsel %vm95_vm0, %v519_v9, 0.0 }
 0x58b   :  { %524 = vadd.xlane.f32.xlu2 %v523_v10 }
 0x5f5   :  { %v522_v19 = vpop.xlane.xlu1 %521 }
 0x5f6   :  { %v526_v20 = vmul.f32 %v522_v19, %v1261_v2 }
 0x5f8   :  { %v528_v21 = vadd.f32 1e-05, %v526_v20 }
 0x5fa   :  { %910 = vrsqrt.f32 %v528_v21  ;;  %vm536_vm7 = vweird.f32 %v528_v21 }
 0x5fe   :  { %v525_v27 = vpop.xlane.xlu2 %524 }
 0x5ff   :  { %v527_v28 = vmul.f32 %v525_v27, %v1261_v2 }
 0x600   :  { %v911_v30 = vpop.eup %910 }
 0x601   :  { %v531_v31 = vmul.f32 %v911_v30, %v528_v21  ;;  %v529_v32 = vadd.f32 1e-05, %v527_v28  ;;  %vm537_vm6 = vweird.f32 %v911_v30 }
 0x602   :  { %vm538_vm8 = vmor %vm536_vm7, %vm537_vm6 }
 0x603   :  { %v532_v34 = vmul.f32 %v911_v30, %v531_v31  ;;  %912 = vrsqrt.f32 %v529_v32  ;;  %vm546_vm10 = vweird.f32 %v529_v32  ;;  %v75_v31 = vld [vmem:[#allocation2 + $0x58] sm:$0xff] }
 0x605   :  { %v533_v35 = vmul.f32 0.5, %v532_v34 }
 0x607   :  { %v534_v36 = vsub.f32 1.5, %v533_v35 }
 0x609   :  { %v913_v37 = vpop.eup %912  ;;  %v535_v38 = vmul.f32 %v911_v30, %v534_v36 }
 0x60a   :  { %v541_v40 = vmul.f32 %v913_v37, %v529_v32  ;;  %vm547_vm9 = vweird.f32 %v913_v37  ;;  %v74_v32 = vld [vmem:[#allocation2 + $0x38] sm:$0xff] }
 0x60b   :  { %v539_v42 = vsel %vm538_vm8, %v911_v30, %v535_v38  ;;  %vm548_vm11 = vmor %vm546_vm10, %vm547_vm9  ;;  %v76_v30 = vld [vmem:[#allocation2 + $0x78] sm:$0xff] }
 0x60c   :  { %v550_v43 = vmul.f32 %v539_v42, %v516_v6  ;;  %v542_v44 = vmul.f32 %v913_v37, %v541_v40  ;;  %691 = vmatpush.msra.mxu0 %v76_v30 }
 0x60e   :  { %v543_v46 = vmul.f32 0.5, %v542_v44  ;;  %v553_v47 = vmul.f32 %v869_v41, %v550_v43  ;;  %692 = vmatpush.msra.mxu0 %v75_v31 }
 0x610   :  { %v544_v48 = vsub.f32 1.5, %v543_v46  ;;  %v556_v49 = vadd.f32 %v870_v45, %v553_v47  ;;  %693 = vmatpush.msra.mxu0 %v74_v32 }
 0x612   :  { %v545_v50 = vmul.f32 %v913_v37, %v544_v48  ;;  %815 = vmatmul.msk.f32.vlgmr.msrb.gmra.mxu3 %vm95_vm0, %v556_v49  ;;  %694 = vmatpush.msra.mxu0 %v73_v33  ;;  %v873_v48 = vld [vmem:[%s1347_s3 + $0x6] ss:$0 sm:$0xff] }
 0x613   :  { %732 = vmatpush.msrb.mxu3 %v717_v56 }
 0x614   :  { %v549_v11 = vsel %vm548_vm11, %v913_v37, %v545_v50 }
 0x615   :  { %v551_v14 = vmul.f32 %v549_v11, %v517_v13  ;;  %733 = vmatpush.msrb.mxu3 %v716_v39 }
 0x617   :  { %v554_v51 = vmul.f32 %v869_v41, %v551_v14  ;;  %734 = vmatpush.msrb.mxu3 %v715_v57  ;;  %v874_v14 = vld [vmem:[%s1347_s3 + $0x7] ss:$0 sm:$0xff] }
 0x619   :  { %v557_v52 = vadd.f32 %v870_v45, %v554_v51  ;;  %735 = vmatpush.msrb.mxu3 %v714_v58 }
 0x61b   :  { %816 = vmatmul.msk.f32.gmra.mxu3 %vm95_vm0, %v557_v52 }
 0x61c   :  { %736 = vmatpush.msrb.mxu3 %v713_v59  ;;  %v875_v59 = vld [vmem:[%s1347_s3 + $0x8] ss:$0 sm:$0xff] }
 0x61e   :  { %737 = vmatpush.msrb.mxu3 %v712_v60 }
 0x620   :  { %738 = vmatpush.msrb.mxu3 %v711_v61 }
 0x622   :  { %739 = vmatpush.msrb.mxu3 %v710_v62 }
 0x695   :  { %v582_v0 = vpop.f32.mrf.mxu3 }
 0x696   :  { %v583_v1 = vadd.f32 %v871_v63, %v582_v0 }
 0x698   :  { %v588_v4 = vmax.f32 %v583_v1, 0.0 }
 0x69a   :  { %817 = vmatmul.msk.f32.vlgmr.msra.gmra.mxu3 %vm259_vm2, %v588_v4 }
 0x69e   :  { %v585_v3 = vpop.f32.mrf.mxu3 }
 0x69f   :  { %v586_v6 = vadd.f32 %v871_v63, %v585_v3 }
 0x6a1   :  { %v589_v7 = vmax.f32 %v586_v6, 0.0 }
 0x6a3   :  { %818 = vmatmul.msk.f32.gmra.mxu3 %vm259_vm2, %v589_v7 }
 0x6ab   :  { %821 = vmatmul.msk.f32.vlgmr.msrb.gmra.mxu3 %vm259_vm2, %v1241_v25 }
 0x6b3   :  { %822 = vmatmul.msk.f32.gmra.mxu3 %vm259_vm2, %v1238_v26 }
 0x71d   :  { %v614_v8 = vpop.f32.mrf.mxu3 }
 0x71e   :  { %v615_v12 = vadd.f32 %v872_v5, %v614_v8 }
 0x720   :  { %v620_v13 = vadd.f32 %v615_v12, %v556_v49 }
 0x722   :  { %v622_v9 = vsel %vm95_vm0, %v620_v13, 0.0 }
 0x723   :  { %623 = vadd.xlane.f32.xlu0 %v622_v9 }
 0x726   :  { %v617_v10 = vpop.f32.mrf.mxu3 }
 0x727   :  { %v618_v15 = vadd.f32 %v872_v5, %v617_v10 }
 0x729   :  { %v621_v16 = vadd.f32 %v618_v15, %v557_v52 }
 0x72b   :  { %v625_v17 = vsel %vm95_vm0, %v621_v16, 0.0 }
 0x72c   :  { %626 = vadd.xlane.f32.xlu1 %v625_v17 }
 0x72e   :  { %v741_v25 = vpop.f32.mrf.mxu3 }
 0x72f   :  { %747 = vst [vmem:[#allocation8] sm:$0xff] %v741_v25 }
 0x736   :  { %v744_v18 = vpop.f32.mrf.mxu3 }
 0x737   :  { %748 = vst [vmem:[#allocation8 + $0x8] sm:$0xff] %v744_v18 }
 0x738   :  { %774 = dma.vmem_to_hbm [thread:$0]  %s767_s0, 256, %s769_s24, [#allocation9], %s1026_s13, %s1026_s13, %s1027_s14  }
 0x796   :  { %v624_v26 = vpop.xlane.xlu0 %623 }
 0x797   :  { %v628_v19 = vmul.f32 %v624_v26, %v1261_v2 }
 0x799   :  { %v630_v20 = vsub.f32 %v620_v13, %v628_v19 }
 0x79b   :  { %v632_v21 = vmul.f32 %v630_v20, %v630_v20 }
 0x79d   :  { %v634_v22 = vsel %vm95_vm0, %v632_v21, 0.0 }
 0x79e   :  { %635 = vadd.xlane.f32.xlu2 %v634_v22 }
 0x79f   :  { %v627_v23 = vpop.xlane.xlu1 %626 }
 0x7a0   :  { %v629_v24 = vmul.f32 %v627_v23, %v1261_v2 }
 0x7a2   :  { %v631_v27 = vsub.f32 %v621_v16, %v629_v24 }
 0x7a4   :  { %v633_v28 = vmul.f32 %v631_v27, %v631_v27 }
 0x7a6   :  { %v637_v29 = vsel %vm95_vm0, %v633_v28, 0.0 }
 0x7a7   :  { %638 = vadd.xlane.f32.xlu0 %v637_v29 }
 0x811   :  { %v636_v34 = vpop.xlane.xlu2 %635 }
 0x812   :  { %v640_v35 = vmul.f32 %v636_v34, %v1261_v2 }
 0x814   :  { %v642_v36 = vadd.f32 1e-05, %v640_v35 }
 0x816   :  { %914 = vrsqrt.f32 %v642_v36  ;;  %vm650_vm13 = vweird.f32 %v642_v36 }
 0x81a   :  { %v639_v37 = vpop.xlane.xlu0 %638 }
 0x81b   :  { %v641_v38 = vmul.f32 %v639_v37, %v1261_v2 }
 0x81c   :  { %v915_v40 = vpop.eup %914 }
 0x81d   :  { %v645_v41 = vmul.f32 %v915_v40, %v642_v36  ;;  %v643_v42 = vadd.f32 1e-05, %v641_v38  ;;  %vm651_vm12 = vweird.f32 %v915_v40 }
 0x81e   :  { %vm652_vm14 = vmor %vm650_vm13, %vm651_vm12 }
 0x81f   :  { %v646_v43 = vmul.f32 %v915_v40, %v645_v41  ;;  %916 = vrsqrt.f32 %v643_v42  ;;  %vm660_vm1 = vweird.f32 %v643_v42 }
 0x821   :  { %v647_v44 = vmul.f32 0.5, %v646_v43 }
 0x823   :  { %v648_v45 = vsub.f32 1.5, %v647_v44 }
 0x825   :  { %v917_v46 = vpop.eup %916  ;;  %v649_v47 = vmul.f32 %v915_v40, %v648_v45 }
 0x826   :  { %v655_v49 = vmul.f32 %v917_v46, %v643_v42  ;;  %vm661_vm15 = vweird.f32 %v917_v46 }
 0x827   :  { %v653_v50 = vsel %vm652_vm14, %v915_v40, %v649_v47  ;;  %vm662_vm2 = vmor %vm660_vm1, %vm661_vm15 }
 0x828   :  { %v664_v11 = vmul.f32 %v653_v50, %v630_v20  ;;  %v656_v2 = vmul.f32 %v917_v46, %v655_v49 }
 0x82a   :  { %v667_v51 = vmul.f32 %v873_v48, %v664_v11  ;;  %v657_v52 = vmul.f32 0.5, %v656_v2 }
 0x82c   :  { %v658_v53 = vsub.f32 1.5, %v657_v52  ;;  %v670_v54 = vadd.f32 %v874_v14, %v667_v51 }
 0x82e   :  { %v659_v55 = vmul.f32 %v917_v46, %v658_v53  ;;  %819 = vmatmul.msk.f32.vlgmr.msra.gmra.mxu0 %vm95_vm0, %v670_v54 }
 0x830   :  { %v663_v56 = vsel %vm662_vm2, %v917_v46, %v659_v55 }
 0x831   :  { %v665_v39 = vmul.f32 %v663_v56, %v631_v27 }
 0x833   :  { %v668_v57 = vmul.f32 %v873_v48, %v665_v39 }
 0x835   :  { %v671_v58 = vadd.f32 %v874_v14, %v668_v57 }
 0x837   :  { %820 = vmatmul.msk.f32.gmra.mxu0 %vm95_vm0, %v671_v58 }
 0x8ab   :  { %v696_v60 = vpop.f32.mrf.mxu0 }
 0x8ac   :  { %v697_v61 = vadd.f32 %v875_v59, %v696_v60 }
 0x8ae   :  { %702 = vst [vmem:[#allocation7] sm:$0xff] %v697_v61 }
 0x8b4   :  { %v699_v62 = vpop.f32.mrf.mxu0 }
 0x8b5   :  { %v700_v63 = vadd.f32 %v875_v59, %v699_v62 }
 0x8b7   :  { %703 = vst [vmem:[#allocation7 + $0x8] sm:$0xff] %v700_v63 }
 0x8b8   :  { %761 = dma.vmem_to_hbm [thread:$0]  %s754_s28, 256, %s756_s8, [#allocation4], %s1026_s13, %s1026_s13, %s1027_s14  }
 0x8b9   :  { %1018 = dma.done.wait [#allocation4], 256  }
 0x8ba   :  { %1019 = vsyncadd [#allocation4], 4294967040 }
 0x8bb   :  { %1020 = dma.done.wait [#allocation9], 256  }
 0x8bc   :  { %1021 = vsyncadd [#allocation9], 4294967040 }
 0x8bd   :  { %783 = vsyncpa [#allocation3], 1 }
 0x8be   :  { %784 = vsyncpa [#allocation6], 1 }
 0x8bf   :  { %785 = vsyncpa [#allocation4], 1 }
 0x8c0   :  { %786 = vsyncpa [#allocation9], 1 }

</bundles_post_ra>
